<compile_context>
chip_gen: v7x
topology: tpu7x:2x2x1
jax: 0.10.0
libtpu: 0.0.40
codegen_flags: <defaults>
</compile_context>

<pallas_src>
import functools

import jax
import jax.numpy as jnp
import numpy as np
from jax.experimental import pallas as pl
from jax.experimental.pallas import tpu as pltpu


def _round_up(x, m):
    return ((x + m - 1) // m) * m


def _pinball_sum_kernel(q_ref, preds_ref, target_ref, out_ref, acc_ref, *, inv_n):
    """Accumulate sum_n sum_q max((q-1)*e, q*e) with e = target - pred.

    Lane-dense layout: preds (Q, TN), target (1, TN), quantiles (Q, 1).
    Padded tail columns were zero-filled in the wrapper, so they contribute 0.
    """
    i = pl.program_id(0)

    @pl.when(i == 0)
    def _init():
        acc_ref[0, 0] = jnp.float32(0.0)

    preds = preds_ref[...].astype(jnp.float32)     # (Q, TN)
    target = target_ref[...].astype(jnp.float32)   # (1, TN), sublane-broadcasts
    q = q_ref[...]                                 # (Q, 1),  lane-broadcasts

    err = target - preds                           # (Q, TN)
    pin = jnp.maximum((q - 1.0) * err, q * err)    # (Q, TN)
    acc_ref[0, 0] += jnp.sum(pin)

    @pl.when(i == pl.num_programs(0) - 1)
    def _finalize():
        out_ref[0, 0] = acc_ref[0, 0] * jnp.float32(inv_n)


def pinball_l2_loss(preds, target, quantiles, params, Lambda=1.0, *, block_n=None):
    """Forward pass of the PyTorch pinball_l2_loss module.

    preds:  (N, Q) predictions (one column per quantile)
    target: (N, 1) (or (N,)) true labels
    quantiles: python sequence of Q quantile levels (hyperparameter)
    params: iterable of model parameter arrays (torch `model.parameters()`)
    """
    N, Q = preds.shape
    assert target.shape[0] == N
    assert len(quantiles) == Q

    # --- block / grid selection (N is the streamed, reduced axis) ------------
    if block_n is None:
        block_n = 16384 if N >= 16384 else _round_up(N, 128)
    block_n = max(128, _round_up(int(block_n), 128))
    n_padded = _round_up(N, block_n)
    grid = (n_padded // block_n,)

    # --- lane-dense layout: quantiles on sublanes, samples on lanes ----------
    preds_t = jnp.transpose(preds)                                # (Q, N)
    target_row = jnp.reshape(target, (N, -1))[:, 0].reshape(1, N)  # (1, N)
    pad = n_padded - N
    if pad:
        preds_t = jnp.pad(preds_t, ((0, 0), (0, pad)))
        target_row = jnp.pad(target_row, ((0, 0), (0, pad)))
    q_col = jnp.asarray(quantiles, dtype=jnp.float32).reshape(Q, 1)

    kernel = functools.partial(_pinball_sum_kernel, inv_n=1.0 / float(N))

    cost = pl.CostEstimate(
        flops=4 * n_padded * Q,
        transcendentals=0,
        bytes_accessed=(n_padded * Q * preds_t.dtype.itemsize
                        + n_padded * target_row.dtype.itemsize
                        + Q * 4 + 4),
    )

    pinball_mean = pl.pallas_call(
        kernel,
        out_shape=jax.ShapeDtypeStruct((1, 1), jnp.float32),
        grid_spec=pltpu.PrefetchScalarGridSpec(
            num_scalar_prefetch=0,
            grid=grid,
            in_specs=[
                # quantiles: tiny, resident (same block index every step)
                pl.BlockSpec((Q, 1), lambda i: (0, 0)),
                # streamed, lane-dense blocks over N
                pl.BlockSpec((Q, block_n), lambda i: (0, i)),
                pl.BlockSpec((1, block_n), lambda i: (0, i)),
            ],
            out_specs=pl.BlockSpec((1, 1), lambda i: (0, 0),
                                   memory_space=pltpu.MemorySpace.SMEM),
            scratch_shapes=[pltpu.SMEM((1, 1), jnp.float32)],
        ),
        compiler_params=pltpu.CompilerParams(
            dimension_semantics=("arbitrary",)),
        cost_estimate=cost,
    )(q_col, preds_t, target_row)[0, 0]

    # --- L2 term: sum of torch.norm(param) over model parameters -------------
    # Tiny tensors -> computed once in plain XLA (per performance review).
    l2 = jnp.float32(0.0)
    for p in params:
        p32 = jnp.asarray(p, jnp.float32)
        l2 = l2 + jnp.sqrt(jnp.sum(p32 * p32))

    # TODO(synk): megacore split of the N stream on v7x would need per-core
    # partial outputs; single "arbitrary" reduction axis kept for simplicity.
    return pinball_mean + jnp.float32(Lambda) * l2


# ------------------------------ reference (numpy, mirrors the torch code) ----
def pinball_l2_loss_ref(preds, target, quantiles, params, Lambda):
    preds = np.asarray(preds, np.float64)
    target = np.asarray(target, np.float64)
    losses = []
    for i, q in enumerate(quantiles):
        errors = target[:, 0] - preds[:, i]
        losses.append(np.maximum((q - 1) * errors, q * errors)[:, None])
    loss_pinball = np.mean(np.sum(np.concatenate(losses, axis=1), axis=1))
    l2 = 0.0
    for p in params:
        l2 += np.linalg.norm(np.asarray(p, np.float64))  # torch.norm default
    return loss_pinball + Lambda * l2


if __name__ == "__main__":
    key = jax.random.PRNGKey(0)
    ks = jax.random.split(key, 8)

    quantiles = [0.05, 0.25, 0.45, 0.55, 0.75, 0.95]
    Q = len(quantiles)
    N, D_in, H = 8, 4, 32

    preds = jax.random.normal(ks[0], (N, Q), jnp.float32)
    target = jax.random.normal(ks[1], (N, 1), jnp.float32)
    # small MLP "model": Linear(D_in, H) -> ReLU -> Linear(H, Q)
    W1 = jax.random.normal(ks[2], (H, D_in), jnp.float32) * 0.1
    b1 = jax.random.normal(ks[3], (H,), jnp.float32) * 0.1
    W2 = jax.random.normal(ks[4], (Q, H), jnp.float32) * 0.1
    b2 = jax.random.normal(ks[5], (Q,), jnp.float32) * 0.1
    params = [W1, b1, W2, b2]
    Lambda = 0.7

    loss = pinball_l2_loss(preds, target, quantiles, params, Lambda)
    loss = jax.block_until_ready(loss)
    ref = pinball_l2_loss_ref(np.array(preds), np.array(target), quantiles,
                              [np.array(p) for p in params], Lambda)
    assert np.allclose(float(loss), float(ref), rtol=1e-5, atol=1e-5), (float(loss), float(ref))

    # second check: multiple grid steps + ragged (zero-padded) last tile
    N2 = 1000
    preds2 = jax.random.normal(ks[6], (N2, Q), jnp.float32)
    target2 = jax.random.normal(ks[7], (N2, 1), jnp.float32)
    loss2 = pinball_l2_loss(preds2, target2, quantiles, params, Lambda, block_n=256)
    loss2 = jax.block_until_ready(loss2)
    ref2 = pinball_l2_loss_ref(np.array(preds2), np.array(target2), quantiles,
                               [np.array(p) for p in params], Lambda)
    assert np.allclose(float(loss2), float(ref2), rtol=1e-4, atol=1e-4), (float(loss2), float(ref2))

    print("KERNEL_OK")
</pallas_src>

<mosaic_0001>
module attributes {stable_mosaic.version = 11 : i64} {
  func.func @_pinball_sum_kernel(%arg0: i32, %arg1: memref<6x1xf32, #tpu.memory_space<vmem>>, %arg2: memref<6x128xf32, #tpu.memory_space<vmem>>, %arg3: memref<1x128xf32, #tpu.memory_space<vmem>>, %arg4: memref<1x1xf32, #tpu.memory_space<smem>>, %arg5: memref<1x1xf32, #tpu.memory_space<smem>>) attributes {dimension_semantics = [#tpu.dimension_semantics<arbitrary>], iteration_bounds = array<i64: 1>, scalar_prefetch = 0 : i64, scratch_operands = 1 : i64, tpu.core_type = #tpu.core_type<tc>, window_params = [{pipeline_mode = #tpu.pipeline_mode<synchronous>, transform_indices = @transform_0, window_bounds = array<i64: 6, 1>}, {transform_indices = @transform_1, window_bounds = array<i64: 6, 128>}, {transform_indices = @transform_2, window_bounds = array<i64: 1, 128>}, {transform_indices = @transform_3, window_bounds = array<i64: 1, 1>}]} {
    %c0_i32 = arith.constant 0 : i32
    %0 = arith.cmpi eq, %arg0, %c0_i32 : i32
    %1 = arith.extui %0 : i1 to i32
    %c0_i32_0 = arith.constant 0 : i32
    %2 = arith.cmpi ne, %1, %c0_i32_0 : i32
    scf.if %2 {
      %cst_13 = arith.constant 0.000000e+00 : f32
      %c0_14 = arith.constant 0 : index
      %c0_15 = arith.constant 0 : index
      %25 = memref.load %arg5[%c0_14, %c0_15] : memref<1x1xf32, #tpu.memory_space<smem>>
      memref.store %cst_13, %arg5[%c0_14, %c0_15] : memref<1x1xf32, #tpu.memory_space<smem>>
    } else {
    }
    %c0 = arith.constant 0 : index
    %c0_1 = arith.constant 0 : index
    %3 = vector.load %arg2[%c0, %c0_1] : memref<6x128xf32, #tpu.memory_space<vmem>>, vector<6x128xf32>
    %c0_2 = arith.constant 0 : index
    %c0_3 = arith.constant 0 : index
    %4 = vector.load %arg3[%c0_2, %c0_3] : memref<1x128xf32, #tpu.memory_space<vmem>>, vector<1x128xf32>
    %c0_4 = arith.constant 0 : index
    %c0_5 = arith.constant 0 : index
    %5 = vector.load %arg1[%c0_4, %c0_5] : memref<6x1xf32, #tpu.memory_space<vmem>>, vector<6x1xf32>
    %6 = vector.broadcast %4 : vector<1x128xf32> to vector<6x128xf32>
    %7 = arith.subf %6, %3 : vector<6x128xf32>
    %cst = arith.constant 1.000000e+00 : f32
    %8 = vector.broadcast %cst : f32 to vector<6x1xf32>
    %9 = arith.subf %5, %8 : vector<6x1xf32>
    %10 = vector.broadcast %9 : vector<6x1xf32> to vector<6x128xf32>
    %11 = arith.mulf %10, %7 : vector<6x128xf32>
    %12 = vector.broadcast %5 : vector<6x1xf32> to vector<6x128xf32>
    %13 = arith.mulf %12, %7 : vector<6x128xf32>
    %14 = arith.maximumf %11, %13 : vector<6x128xf32>
    %c0_6 = arith.constant 0 : index
    %c0_7 = arith.constant 0 : index
    %15 = memref.load %arg5[%c0_6, %c0_7] : memref<1x1xf32, #tpu.memory_space<smem>>
    %16 = vector.shape_cast %14 : vector<6x128xf32> to vector<1x6x128xf32>
    %cst_8 = arith.constant dense<0.000000e+00> : vector<1xf32>
    %17 = vector.multi_reduction <add>, %16, %cst_8 [1, 2] : vector<1x6x128xf32> to vector<1xf32>
    %18 = vector.shape_cast %17 : vector<1xf32> to vector<1x1x1xf32>
    %19 = vector.extract %18[0, 0, 0] : f32 from vector<1x1x1xf32>
    %20 = arith.addf %15, %19 : f32
    %c0_9 = arith.constant 0 : index
    %c0_10 = arith.constant 0 : index
    %21 = memref.load %arg5[%c0_9, %c0_10] : memref<1x1xf32, #tpu.memory_space<smem>>
    memref.store %20, %arg5[%c0_9, %c0_10] : memref<1x1xf32, #tpu.memory_space<smem>>
    %c0_i32_11 = arith.constant 0 : i32
    %22 = arith.cmpi eq, %arg0, %c0_i32_11 : i32
    %23 = arith.extui %22 : i1 to i32
    %c0_i32_12 = arith.constant 0 : i32
    %24 = arith.cmpi ne, %23, %c0_i32_12 : i32
    scf.if %24 {
      %c0_13 = arith.constant 0 : index
      %c0_14 = arith.constant 0 : index
      %25 = memref.load %arg5[%c0_13, %c0_14] : memref<1x1xf32, #tpu.memory_space<smem>>
      %cst_15 = arith.constant 1.250000e-01 : f32
      %26 = arith.mulf %25, %cst_15 : f32
      %c0_16 = arith.constant 0 : index
      %c0_17 = arith.constant 0 : index
      %27 = memref.load %arg4[%c0_16, %c0_17] : memref<1x1xf32, #tpu.memory_space<smem>>
      memref.store %26, %arg4[%c0_16, %c0_17] : memref<1x1xf32, #tpu.memory_space<smem>>
    } else {
    }
    return
  }
  func.func @transform_0(%arg0: i32) -> (i32, i32) {
    %c0_i32 = arith.constant 0 : i32
    %c0_i32_0 = arith.constant 0 : i32
    %c0_i32_1 = arith.constant 0 : i32
    return %c0_i32, %c0_i32_0 : i32, i32
  }
  func.func @transform_1(%arg0: i32) -> (i32, i32) {
    %c0_i32 = arith.constant 0 : i32
    %c0_i32_0 = arith.constant 0 : i32
    return %c0_i32, %arg0 : i32, i32
  }
  func.func @transform_2(%arg0: i32) -> (i32, i32) {
    %c0_i32 = arith.constant 0 : i32
    %c0_i32_0 = arith.constant 0 : i32
    return %c0_i32, %arg0 : i32, i32
  }
  func.func @transform_3(%arg0: i32) -> (i32, i32) {
    %c0_i32 = arith.constant 0 : i32
    %c0_i32_0 = arith.constant 0 : i32
    %c0_i32_1 = arith.constant 0 : i32
    return %c0_i32, %c0_i32_0 : i32, i32
  }
}

</mosaic_0001>

<bundles_post_ra>
// kernel: tpu_custom_call.1
= control target key start
LH: loop header
LB: loop body
LE: loop exit
PB: predicated region body
PF: predicated region fallthrough
CT: control target
= control target key end

     0   :  { %v99_v1 = vmov 0   ;;  %s142_s0 = inlined_call_operand.vmem [shape: f32[6,1], index: 0, kind: input, shape index: {}]   ;;  %s143_s1 = inlined_call_operand.vmem [shape: f32[6,128], index: 1, kind: input, shape index: {}]   ;;  %s144_s2 = inlined_call_operand.vmem [shape: f32[1,128], index: 2, kind: input, shape index: {}]   ;;  %s145_s3 = inlined_call_operand.hbm [shape: f32[1,1], index: 3, kind: output, shape index: {}]  }
   0x1   :  { %v23_v0 = vld [vmem:[%s142_s0] sm:$0x3f]  ;;  %86 = vset.pattern.permute.xlu0 %v99_v1 }
   0x2   :  { %v81_v2 = vadd.f32 -1.0, %v23_v0 }
   0x3   :  { %8 = vsyncpa [#allocation4], 0  ;;  %v21_v3 = vld [vmem:[%s143_s1] sm:$0x3f]  ;;  %vm46_vm0 = vcmask 1045504   ;;  %s87_s19 = scalar_lea.hbm %s145_s3, 16 }
   0x4   :  { %34 = vperm.xlu0 %86, %v81_v2   ;;  %v80_v4 = vld [vmem:[%s144_s2] ss:$0 sm:$0xff]  ;;  %p88_p0 = scmp.ne.s32.totalorder %s145_s3, %s87_s19  ;;  %p91_p1 = scmp.lt.u32.totalorder %s87_s19, %s145_s3 }
   0x5   :  { %v30_v6 = vsub.f32 %v80_v4, %v21_v3 }
   0x6   :  { %p93_p2 = pnand %p91_p1, %p88_p0 }
   0x8   :  { %40 = vperm.xlu0 %86, %v23_v0  }
  0x83   :  { %v35_v5 = vpop.permute.xlu0 %34 }
  0x84   :  { %v37_v8 = vmul.f32 %v35_v5, %v30_v6 }
  0x87   :  { %v41_v7 = vpop.permute.xlu0 %40 }
  0x88   :  { %v43_v9 = vmul.f32 %v41_v7, %v30_v6 }
  0x8a   :  { %v44_v10 = vmax.f32 %v37_v8, %v43_v9 }
  0x8c   :  { %v47_v11 = vsel %vm46_vm0, %v44_v10, 0.0 }
  0x8d   :  { %48 = vadd.xlane.f32.xlu1 %v47_v11 }
 0x11a   :  { %v49_v12 = vpop.xlane.xlu1 %48 }
 0x11b   :  { %v50_v13 = vrot.slane %v49_v12, 4 }
 0x11d   :  { %v51_v14 = vadd.f32 %v50_v13, %v49_v12 }
 0x11f   :  { %v52_v15 = vrot.slane %v51_v14, 2 }
 0x121   :  { %v53_v16 = vadd.f32 %v52_v15, %v51_v14 }
 0x123   :  { %v54_v17 = vrot.slane %v53_v16, 1 }
 0x125   :  { %v55_v18 = vadd.f32 %v54_v17, %v53_v16 }
 0x127   :  { %82 = vpush %v55_v18 }
 0x158   :  { %s83_s0 = spop %82 }
 0x159   :  { %s64_s1 = smul.f32 0.125, %s83_s0 }
 0x15b   :  { %66 = sst [smem:[#allocation3]] %s64_s1 }
 0x15c   :  { %96 = shalt.err (!%p93_p2)
}
 0x15d   :  { %s100_s24 = smov [#allocation3]  }
 0x15e   :  { %74 = dma.smem_to_hbm %s100_s24, 16, %s145_s3, [#allocation4]  }
 0x15f   :  { %97 = dma.done.wait [#allocation4], 16  }
 0x160   :  { %98 = vsyncadd [#allocation4], 4294967280 }
 0x161   :  { %78 = sfence }
 0x162   :  { %79 = vsyncpa [#allocation4], 1 }

</bundles_post_ra>
